<compile_context>
chip_gen: v7x
topology: tpu7x:2x2x1
jax: 0.10.0
libtpu: 0.0.40
codegen_flags: <defaults>
</compile_context>

<pallas_src>
import functools

import jax
import jax.numpy as jnp
from jax.experimental import pallas as pl
from jax.experimental.pallas import tpu as pltpu


# ----------------------------------------------------------------------------
# helpers
# ----------------------------------------------------------------------------
def _round_up(x, m):
    return ((x + m - 1) // m) * m


def _pad2d(a, rows, cols):
    r, c = a.shape
    if r == rows and c == cols:
        return a
    return jnp.pad(a, ((0, rows - r), (0, cols - c)))


@functools.lru_cache(maxsize=None)
def _vmem_limit_bytes():
    # Per-generation scoped-VMEM budget: half of physical, capped at 64 MiB.
    #   v5e / v6e (128 MiB physical) -> 64 MiB, v7x (64 MiB physical) -> 32 MiB.
    # Conservative 32 MiB fallback when the query is unavailable.
    try:
        cap = int(pltpu.get_tpu_info().vmem_capacity_bytes)
        return int(min(cap // 2, 64 * 1024 * 1024))
    except Exception:
        return 32 * 1024 * 1024


# ----------------------------------------------------------------------------
# 1) Tiled linear forward:  o = x @ W + b   (bf16 MXU operands, f32 accumulate)
# ----------------------------------------------------------------------------
def _linear_kernel(x_ref, w_ref, b_ref, o_ref, acc_ref):
    k = pl.program_id(2)

    @pl.when(k == 0)
    def _():
        acc_ref[...] = jnp.zeros_like(acc_ref)

    acc_ref[...] += jnp.dot(
        x_ref[...], w_ref[...], preferred_element_type=jnp.float32
    )

    @pl.when(k == pl.num_programs(2) - 1)
    def _():
        o_ref[...] = (acc_ref[...] + b_ref[...]).astype(o_ref.dtype)


def linear_forward(x, w, b, *, tm=512, tn=256, tk=1024):
    # NOTE: on v5e a tn of 128 maps more cleanly onto the 4x128^2 MXU; 256 is a
    # good default for v6e/v7x (2x256^2 MXU) and still correct on v5e.
    B, D = x.shape
    C = w.shape[1]
    tm = min(tm, _round_up(B, 8))
    tn = min(tn, _round_up(C, 128))   # lane-dense output (>=128 lanes)
    tk = min(tk, _round_up(D, 128))
    Bp, Dp, Cp = _round_up(B, tm), _round_up(D, tk), _round_up(C, tn)

    # v7x megacore: when there is only one tile along N, try to expose >= 2
    # batch tiles so the "parallel" axes actually shard across both TCs.
    if Cp // tn == 1 and Bp // tm == 1 and Bp >= 16:
        tm = _round_up(Bp // 2, 8)
        Bp = _round_up(B, tm)

    # bf16 operands produced in the wrapper: halves DMA bytes & VMEM footprint.
    xp = _pad2d(x, Bp, Dp).astype(jnp.bfloat16)
    wp = _pad2d(w, Dp, Cp).astype(jnp.bfloat16)
    bp = _pad2d(b.reshape(1, -1).astype(jnp.float32), 1, Cp)

    out = pl.pallas_call(
        _linear_kernel,
        out_shape=jax.ShapeDtypeStruct((Bp, Cp), jnp.float32),
        grid=(Bp // tm, Cp // tn, Dp // tk),
        in_specs=[
            pl.BlockSpec((tm, tk), lambda i, j, k: (i, k)),
            pl.BlockSpec((tk, tn), lambda i, j, k: (k, j)),
            pl.BlockSpec((1, tn), lambda i, j, k: (0, j)),
        ],
        out_specs=pl.BlockSpec((tm, tn), lambda i, j, k: (i, j)),
        scratch_shapes=[pltpu.VMEM((tm, tn), jnp.float32)],
        compiler_params=pltpu.CompilerParams(
            dimension_semantics=("parallel", "parallel", "arbitrary"),
            vmem_limit_bytes=_vmem_limit_bytes(),
        ),
    )(xp, wp, bp)
    return out[:B, :C]


# ----------------------------------------------------------------------------
# 2) Fused forward + log_softmax + KLDivLoss(batchmean)
#    Per-batch-tile partial losses -> batch axis "parallel" (2 TCs on v7x).
# ----------------------------------------------------------------------------
def _fused_linear_kl_kernel(x_ref, w_ref, b_ref, y_ref, part_ref, acc_ref,
                            *, valid_c):
    k = pl.program_id(1)
    nk = pl.num_programs(1)

    @pl.when(k == 0)
    def _():
        acc_ref[...] = jnp.zeros_like(acc_ref)

    acc_ref[...] += jnp.dot(
        x_ref[...], w_ref[...], preferred_element_type=jnp.float32
    )

    @pl.when(k == nk - 1)
    def _():
        logits = acc_ref[...] + b_ref[...]
        # mask padded lane columns out of the softmax
        col = jax.lax.broadcasted_iota(jnp.int32, logits.shape, 1)
        logits = jnp.where(col < valid_c, logits, -1e30)
        m = jnp.max(logits, axis=1, keepdims=True)
        z = logits - m
        logp = z - jnp.log(jnp.sum(jnp.exp(z), axis=1, keepdims=True))
        y = y_ref[...]
        safe_y = jnp.where(y > 0.0, y, 1.0)
        pw = jnp.where(y > 0.0, y * (jnp.log(safe_y) - logp), 0.0)
        part = jnp.sum(pw)
        # lane-dense per-batch-tile partial; wrapper reduces over tiles
        part_ref[...] = jnp.broadcast_to(part, part_ref.shape)


def fused_linear_kl_loss(x, w, b, y, *, tb=512, tk=1024):
    B, D = x.shape
    C = w.shape[1]
    tb = min(tb, _round_up(B, 8))
    tk = min(tk, _round_up(D, 128))
    Cp = _round_up(C, 128)
    Bp, Dp = _round_up(B, tb), _round_up(D, tk)
    nb, nk = Bp // tb, Dp // tk

    xp = _pad2d(x, Bp, Dp).astype(jnp.bfloat16)
    wp = _pad2d(w, Dp, Cp).astype(jnp.bfloat16)
    bp = _pad2d(b.reshape(1, -1).astype(jnp.float32), 1, Cp)
    yp = _pad2d(y.astype(jnp.float32), Bp, Cp)

    kernel = functools.partial(_fused_linear_kl_kernel, valid_c=C)
    parts = pl.pallas_call(
        kernel,
        out_shape=jax.ShapeDtypeStruct((nb, 8, 128), jnp.float32),
        grid=(nb, nk),
        in_specs=[
            pl.BlockSpec((tb, tk), lambda i, k: (i, k)),
            # W's block index does not depend on i; with large tk (small nk)
            # the pipeline keeps it resident instead of re-streaming it for
            # every batch tile.
            pl.BlockSpec((tk, Cp), lambda i, k: (k, 0)),
            pl.BlockSpec((1, Cp), lambda i, k: (0, 0)),
            pl.BlockSpec((tb, Cp), lambda i, k: (i, 0)),
        ],
        out_specs=pl.BlockSpec((1, 8, 128), lambda i, k: (i, 0, 0)),
        scratch_shapes=[pltpu.VMEM((tb, Cp), jnp.float32)],
        compiler_params=pltpu.CompilerParams(
            dimension_semantics=("parallel", "arbitrary"),
            vmem_limit_bytes=_vmem_limit_bytes(),
        ),
    )(xp, wp, bp, yp)
    return jnp.sum(parts[:, 0, 0]) / B  # 'batchmean'


# ----------------------------------------------------------------------------
# 3) AWP attack step — two tiled mem-bound passes
# ----------------------------------------------------------------------------
def _sumsq_kernel(g_ref, p_ref, part_ref):
    g = g_ref[...]
    p = p_ref[...]
    sg = jnp.sum(g * g)
    sp = jnp.sum(p * p)
    row = jax.lax.broadcasted_iota(jnp.int32, part_ref.shape, 1)
    # row 0 <- ||grad||^2 partial, row 1 <- ||param||^2 partial
    part_ref[...] = jnp.where(row == 0, sg, jnp.where(row == 1, sp, 0.0))


def _apply_kernel(s_ref, p_ref, g_ref, bkp_ref, out_ref):
    # s_ref (SMEM): [adv_lr, adv_eps, sumsq_grad, sumsq_param]
    e = 1e-6
    adv_lr = s_ref[0]
    adv_eps = s_ref[1]
    norm1 = jnp.sqrt(s_ref[2])
    norm2 = jnp.sqrt(s_ref[3])
    # scalar factor hoisted out of the vector math -> one vmul per element
    scale = adv_lr * (norm2 + e) / (norm1 + e)

    p = p_ref[...]
    g = g_ref[...]
    bkp = bkp_ref[...]

    new_p = p + g * scale
    eps_abs = adv_eps * jnp.abs(bkp)
    new_p = jnp.minimum(jnp.maximum(new_p, bkp - eps_abs), bkp + eps_abs)

    ok = (norm1 != 0.0) & jnp.logical_not(jnp.isnan(norm1)) \
         & jnp.logical_not(jnp.isnan(norm2))
    out_ref[...] = jnp.where(ok, new_p, p)


def _attack_step_small(param, grad, backup, adv_lr, adv_eps):
    # plain-JAX path for tiny tensors (pallas_call launch overhead dominates)
    e = 1e-6
    norm1 = jnp.sqrt(jnp.sum(grad * grad))
    norm2 = jnp.sqrt(jnp.sum(param * param))
    new_p = param + adv_lr * grad / (norm1 + e) * (norm2 + e)
    eps_abs = adv_eps * jnp.abs(backup)
    new_p = jnp.minimum(jnp.maximum(new_p, backup - eps_abs), backup + eps_abs)
    ok = (norm1 != 0.0) & jnp.logical_not(jnp.isnan(norm1)) \
         & jnp.logical_not(jnp.isnan(norm2))
    return jnp.where(ok, new_p, param)


_MIN_PALLAS_ELEMS = 2048
_LANE = 512
_BLOCK_BYTES = 2 * 1024 * 1024   # ~2 MiB f32 blocks: ~85% of HBM roofline


def _pick_tile_rows(rows, cols):
    # largest multiple of 8 that divides `rows` and keeps a block <= _BLOCK_BYTES
    target = max(8, (_BLOCK_BYTES // (4 * cols)) // 8 * 8)
    tr = max(8, min(rows, target) // 8 * 8)
    while rows % tr != 0:
        tr -= 8
    return max(tr, 8)


def attack_step(param, grad, backup, adv_lr, adv_eps):
    if param.size < _MIN_PALLAS_ELEMS:
        return _attack_step_small(param, grad, backup, adv_lr, adv_eps)

    orig_dtype = param.dtype
    # Fast path: tensor already has a TPU-friendly 2-D layout -> no pad /
    # flatten / reshape copies (pure mem-bound kernel; copies ~double traffic).
    natural = (
        param.ndim == 2
        and param.shape[0] % 8 == 0
        and param.shape[1] % 128 == 0
        and param.shape[1] * 8 * 4 <= 2 * _BLOCK_BYTES
    )
    if natural:
        R, C = param.shape
        tile_rows = _pick_tile_rows(R, C)
        p2 = param.astype(jnp.float32)
        g2 = grad.astype(jnp.float32)
        b2 = backup.astype(jnp.float32)
    else:
        n = param.size
        C = _LANE
        R0 = _round_up(pl.cdiv(n, C), 8)
        tile_rows = min(max(8, (_BLOCK_BYTES // (4 * C)) // 8 * 8), R0)
        R = _round_up(R0, tile_rows)
        total = R * C

        def prep(a):
            flat = a.astype(jnp.float32).reshape(-1)
            if total != n:
                flat = jnp.pad(flat, (0, total - n))
            return flat.reshape(R, C)

        p2, g2, b2 = prep(param), prep(grad), prep(backup)

    nt = R // tile_rows

    # pass 1: per-tile partial ||grad||^2 / ||param||^2, reduced in the wrapper
    # (keeps the grid "parallel" -> both TensorCores on v7x; zero padding is
    # harmless for the sums).
    parts = pl.pallas_call(
        _sumsq_kernel,
        out_shape=jax.ShapeDtypeStruct((nt, 8, 128), jnp.float32),
        grid=(nt,),
        in_specs=[
            pl.BlockSpec((tile_rows, C), lambda i: (i, 0)),
            pl.BlockSpec((tile_rows, C), lambda i: (i, 0)),
        ],
        out_specs=pl.BlockSpec((1, 8, 128), lambda i: (i, 0, 0)),
        compiler_params=pltpu.CompilerParams(
            dimension_semantics=("parallel",),
            vmem_limit_bytes=_vmem_limit_bytes(),
        ),
    )(g2, p2)
    sumsq_grad = jnp.sum(parts[:, 0, 0])
    sumsq_param = jnp.sum(parts[:, 1, 0])

    # runtime SMEM scalars -> no recompile when adv_lr / adv_eps change
    scalars = jnp.stack([
        jnp.asarray(adv_lr, jnp.float32),
        jnp.asarray(adv_eps, jnp.float32),
        sumsq_grad.astype(jnp.float32),
        sumsq_param.astype(jnp.float32),
    ])

    # pass 2: tiled elementwise apply + clamp to [backup - eps, backup + eps]
    new_p2 = pl.pallas_call(
        _apply_kernel,
        out_shape=jax.ShapeDtypeStruct((R, C), jnp.float32),
        grid=(nt,),
        in_specs=[
            pl.BlockSpec(memory_space=pltpu.MemorySpace.SMEM),
            pl.BlockSpec((tile_rows, C), lambda i: (i, 0)),
            pl.BlockSpec((tile_rows, C), lambda i: (i, 0)),
            pl.BlockSpec((tile_rows, C), lambda i: (i, 0)),
        ],
        out_specs=pl.BlockSpec((tile_rows, C), lambda i: (i, 0)),
        compiler_params=pltpu.CompilerParams(
            dimension_semantics=("parallel",),
            vmem_limit_bytes=_vmem_limit_bytes(),
        ),
    )(scalars, p2, g2, b2)

    if natural:
        return new_p2.astype(orig_dtype)
    n = param.size
    flat = new_p2.reshape(-1)
    if flat.size != n:
        flat = flat[:n]
    return flat.reshape(param.shape).astype(orig_dtype)


# ----------------------------------------------------------------------------
# AWP wrapper (mirrors the PyTorch module's structure)
# ----------------------------------------------------------------------------
class AWPPallas:
    def __init__(self, weight, bias, adv_param="weight", adv_lr=1.0, adv_eps=0.2,
                 start_epoch=0, adv_step=1, grad_clip=1.0):
        # inner synthetic model: Linear(D -> C); parameters named like torch.
        self.params = {"head.weight": weight, "head.bias": bias}
        self.adv_param = adv_param
        self.adv_lr = adv_lr
        self.adv_eps = adv_eps
        self.start_epoch = start_epoch
        self.adv_step = adv_step
        self.grad_clip = grad_clip
        self.backup = {}

    # forward(x) == self.model(x): tiled Pallas linear kernel.
    def forward(self, x):
        return linear_forward(x, self.params["head.weight"], self.params["head.bias"])

    def _loss_grads(self, x, y):
        # TODO(synk): grads come from a plain-JAX f32 reference of the same
        # forward (the Pallas forward uses bf16 MXU operands); wiring a custom
        # VJP onto the Pallas kernel would keep both paths guaranteed-identical.
        def ref_loss(w, b):
            logits = x @ w + b
            logp = jax.nn.log_softmax(logits, axis=1)
            safe_y = jnp.where(y > 0.0, y, 1.0)
            pw = jnp.where(y > 0.0, y * (jnp.log(safe_y) - logp), 0.0)
            return jnp.sum(pw) / x.shape[0]

        gw, gb = jax.grad(ref_loss, argnums=(0, 1))(
            self.params["head.weight"], self.params["head.bias"]
        )
        return {"head.weight": gw, "head.bias": gb}

    def _save(self):
        for name, p in self.params.items():
            if self.adv_param in name and name not in self.backup:
                self.backup[name] = p

    def _attack_step(self, grads):
        # TODO(synk): if more than one tensor ever qualifies, concatenate the
        # flattened adv params into one buffer and call attack_step once to
        # amortize pallas_call launch overhead.
        for name, p in self.params.items():
            if self.adv_param in name and name in grads:
                self.params[name] = attack_step(
                    p, grads[name], self.backup[name], self.adv_lr, self.adv_eps
                )

    def _restore(self):
        for name in list(self.backup.keys()):
            self.params[name] = self.backup[name]
        self.backup = {}

    def attack_backward(self, x, y, epoch):
        if self.adv_lr == 0 or epoch < self.start_epoch:
            return None
        self._save()
        adv_loss = None
        for _ in range(self.adv_step):
            grads = self._loss_grads(x, y)
            self._attack_step(grads)                     # Pallas attack kernels
            adv_loss = fused_linear_kl_loss(             # fused fwd + KL kernel
                x, self.params["head.weight"], self.params["head.bias"], y
            )
            # TODO(synk): adv_loss.backward / clip_grad_norm_ / optimizer.step /
            # GradScaler of the outer training loop are stateful optimizer
            # machinery with no Pallas-kernel analogue.
        self._restore()
        return adv_loss


# ----------------------------------------------------------------------------
if __name__ == "__main__":
    key = jax.random.PRNGKey(0)
    kx, ky, kw, kb = jax.random.split(key, 4)

    B, D, C = 8, 256, 8
    x = jax.random.normal(kx, (B, D), jnp.float32)
    y = jax.nn.softmax(jax.random.normal(ky, (B, C), jnp.float32), axis=1)
    W = 0.1 * jax.random.normal(kw, (D, C), jnp.float32)
    b = 0.1 * jax.random.normal(kb, (1, C), jnp.float32)

    awp = AWPPallas(W, b, adv_param="weight", adv_lr=1.0, adv_eps=0.2,
                    start_epoch=0, adv_step=1)

    out = awp.forward(x)                       # Pallas tiled matmul
    adv_loss = awp.attack_backward(x, y, epoch=1)
    jax.block_until_ready((out, adv_loss))

    # --- light correctness checks against plain-JAX references ---
    ref_out = x @ W + b
    assert jnp.allclose(out, ref_out, rtol=5e-2, atol=5e-2), "forward mismatch"

    grads = awp._loss_grads(x, y)
    w_att_ref = _attack_step_small(W, grads["head.weight"], W, 1.0, 0.2)
    w_att_pal = attack_step(W, grads["head.weight"], W, 1.0, 0.2)
    assert jnp.allclose(w_att_pal, w_att_ref, rtol=1e-5, atol=1e-6), "attack mismatch"

    ref_logits = x @ w_att_ref + b
    ref_logp = jax.nn.log_softmax(ref_logits, axis=1)
    ref_loss = jnp.sum(y * (jnp.log(y) - ref_logp)) / B
    assert jnp.abs(adv_loss - ref_loss) < 1e-1, "adv loss mismatch"

    print("KERNEL_OK")
</pallas_src>

<mosaic_0001>
module attributes {stable_mosaic.version = 11 : i64} {
  func.func @_linear_kernel(%arg0: i32, %arg1: i32, %arg2: i32, %arg3: memref<8x256xbf16, #tpu.memory_space<vmem>>, %arg4: memref<256x128xbf16, #tpu.memory_space<vmem>>, %arg5: memref<1x128xf32, #tpu.memory_space<vmem>>, %arg6: memref<8x128xf32, #tpu.memory_space<vmem>>, %arg7: memref<8x128xf32, #tpu.memory_space<vmem>>) attributes {dimension_semantics = [#tpu.dimension_semantics<parallel>, #tpu.dimension_semantics<parallel>, #tpu.dimension_semantics<arbitrary>], iteration_bounds = array<i64: 1, 1, 1>, scalar_prefetch = 0 : i64, scratch_operands = 1 : i64, tpu.core_type = #tpu.core_type<tc>, window_params = [{transform_indices = @transform_0, window_bounds = array<i64: 8, 256>}, {transform_indices = @transform_1, window_bounds = array<i64: 256, 128>}, {transform_indices = @transform_2, window_bounds = array<i64: 1, 128>}, {transform_indices = @transform_3, window_bounds = array<i64: 8, 128>}]} {
    %c0_i32 = arith.constant 0 : i32
    %0 = arith.cmpi eq, %arg2, %c0_i32 : i32
    %1 = arith.extui %0 : i1 to i32
    %c0_i32_0 = arith.constant 0 : i32
    %2 = arith.cmpi ne, %1, %c0_i32_0 : i32
    scf.if %2 {
      %cst_10 = arith.constant 0.000000e+00 : f32
      %12 = vector.broadcast %cst_10 : f32 to vector<8x128xf32>
      %c0_11 = arith.constant 0 : index
      %c0_12 = arith.constant 0 : index
      %13 = vector.load %arg7[%c0_11, %c0_12] : memref<8x128xf32, #tpu.memory_space<vmem>>, vector<8x128xf32>
      tpu.vector_store %arg7[%c0_11, %c0_12], %12 {strides = array<i32>} : memref<8x128xf32, #tpu.memory_space<vmem>>, vector<8x128xf32>,
    } else {
    }
    %c0 = arith.constant 0 : index
    %c0_1 = arith.constant 0 : index
    %3 = vector.load %arg7[%c0, %c0_1] : memref<8x128xf32, #tpu.memory_space<vmem>>, vector<8x128xf32>
    %c0_2 = arith.constant 0 : index
    %c0_3 = arith.constant 0 : index
    %4 = vector.load %arg3[%c0_2, %c0_3] : memref<8x256xbf16, #tpu.memory_space<vmem>>, vector<8x256xbf16>
    %c0_4 = arith.constant 0 : index
    %c0_5 = arith.constant 0 : index
    %5 = vector.load %arg4[%c0_4, %c0_5] : memref<256x128xbf16, #tpu.memory_space<vmem>>, vector<256x128xbf16>
    %cst = arith.constant dense<0.000000e+00> : vector<8x128xf32>
    %6 = tpu.matmul %4, %5, %cst {dimension_numbers = #tpu.dot_dimension_numbers<[1], [0], [0], [1], [0, 0, 1, 1], [], []>} : vector<8x256xbf16>, vector<256x128xbf16>, vector<8x128xf32> -> vector<8x128xf32>
    %7 = arith.addf %3, %6 : vector<8x128xf32>
    %c0_6 = arith.constant 0 : index
    %c0_7 = arith.constant 0 : index
    %8 = vector.load %arg7[%c0_6, %c0_7] : memref<8x128xf32, #tpu.memory_space<vmem>>, vector<8x128xf32>
    tpu.vector_store %arg7[%c0_6, %c0_7], %7 {strides = array<i32>} : memref<8x128xf32, #tpu.memory_space<vmem>>, vector<8x128xf32>,
    %c0_i32_8 = arith.constant 0 : i32
    %9 = arith.cmpi eq, %arg2, %c0_i32_8 : i32
    %10 = arith.extui %9 : i1 to i32
    %c0_i32_9 = arith.constant 0 : i32
    %11 = arith.cmpi ne, %10, %c0_i32_9 : i32
    scf.if %11 {
      %c0_10 = arith.constant 0 : index
      %c0_11 = arith.constant 0 : index
      %12 = vector.load %arg7[%c0_10, %c0_11] : memref<8x128xf32, #tpu.memory_space<vmem>>, vector<8x128xf32>
      %c0_12 = arith.constant 0 : index
      %c0_13 = arith.constant 0 : index
      %13 = vector.load %arg5[%c0_12, %c0_13] : memref<1x128xf32, #tpu.memory_space<vmem>>, vector<1x128xf32>
      %14 = vector.broadcast %13 : vector<1x128xf32> to vector<8x128xf32>
      %15 = arith.addf %12, %14 : vector<8x128xf32>
      %c0_14 = arith.constant 0 : index
      %c0_15 = arith.constant 0 : index
      %16 = vector.load %arg6[%c0_14, %c0_15] : memref<8x128xf32, #tpu.memory_space<vmem>>, vector<8x128xf32>
      tpu.vector_store %arg6[%c0_14, %c0_15], %15 {strides = array<i32>} : memref<8x128xf32, #tpu.memory_space<vmem>>, vector<8x128xf32>,
    } else {
    }
    return
  }
  func.func @transform_0(%arg0: i32, %arg1: i32, %arg2: i32) -> (i32, i32) {
    %c0_i32 = arith.constant 0 : i32
    return %arg0, %arg2 : i32, i32
  }
  func.func @transform_1(%arg0: i32, %arg1: i32, %arg2: i32) -> (i32, i32) {
    %c0_i32 = arith.constant 0 : i32
    return %arg2, %arg1 : i32, i32
  }
  func.func @transform_2(%arg0: i32, %arg1: i32, %arg2: i32) -> (i32, i32) {
    %c0_i32 = arith.constant 0 : i32
    %c0_i32_0 = arith.constant 0 : i32
    return %c0_i32, %arg1 : i32, i32
  }
  func.func @transform_3(%arg0: i32, %arg1: i32, %arg2: i32) -> (i32, i32) {
    %c0_i32 = arith.constant 0 : i32
    return %arg0, %arg1 : i32, i32
  }
}

</mosaic_0001>

<bundles_post_ra>
// kernel: tpu_custom_call.1
= control target key start
LH: loop header
LB: loop body
LE: loop exit
PB: predicated region body
PF: predicated region fallthrough
CT: control target
= control target key end

     0   :  { %8 = vsyncpa [#allocation4], 0  ;;  %s462_s0 = inlined_call_operand.hbm [shape: bf16[8,256], index: 0, kind: input, shape index: {}]   ;;  %s463_s1 = inlined_call_operand.hbm [shape: bf16[256,128], index: 1, kind: input, shape index: {}]   ;;  %s464_s2 = inlined_call_operand.vmem [shape: f32[1,128], index: 2, kind: input, shape index: {}]   ;;  %s465_s3 = inlined_call_operand.hbm [shape: f32[8,128], index: 3, kind: output, shape index: {}]  }
   0x1   :  { %9 = vsyncpa [#allocation7], 0 }
   0x2   :  { %10 = vsyncpa [#allocation5], 0  ;;  %s391_s12 = smov [#allocation3]   ;;  %s392_s14 = smov [#allocation6]  }
   0x3   :  { %s17_s13 = sshll.u32 %s391_s12, 4  ;;  %s26_s15 = sshll.u32 %s392_s14, 4  ;;  %s18_s13 = int_to_ptr.vmem [resolvable:$true] %s17_s13  ;;  %s416_s15 = int_to_ptr.vmem [resolvable:$true] %s26_s15 }
   0x4   :  { %s319_s18 = scalar_lea.hbm %s462_s0, 128 }
   0x5   :  { %p320_p0 = scmp.ne.s32.totalorder %s462_s0, %s319_s18  ;;  %p323_p1 = scmp.lt.u32.totalorder %s319_s18, %s462_s0 }
   0x7   :  { %p325_p2 = pnand %p323_p1, %p320_p0 }
   0x9   :  { %328 = shalt.err (!%p325_p2)
}
   0xa   :  { %s329_s23 = scalar_lea.vmem %s18_s13, 128  ;;  %p334_p4 = scmp.lt.s32.totalorder %s18_s13, %s18_s13 }
   0xb   :  { %p330_p3 = scmp.ne.s32.totalorder %s18_s13, %s329_s23  ;;  %p335_p5 = scmp.lt.s32.totalorder %s329_s23, %s329_s23 }
   0xd   :  { %p336_p6 = por %p335_p5, %p334_p4 }
   0xf   :  { %p337_p7 = pnand %p336_p6, %p330_p3 }
  0x11   :  { %340 = shalt.err (!%p337_p7)
}
  0x12   :  { %20 = dma.hbm_to_vmem [thread:$0]  %s462_s0, 128, %s18_s13, [#allocation4]  }
  0x13   :  { %s341_s28 = scalar_lea.hbm %s463_s1, 2048 }
  0x14   :  { %p342_p8 = scmp.ne.s32.totalorder %s463_s1, %s341_s28  ;;  %p345_p9 = scmp.lt.u32.totalorder %s341_s28, %s463_s1 }
  0x16   :  { %p347_p10 = pnand %p345_p9, %p342_p8 }
  0x18   :  { %350 = shalt.err (!%p347_p10)
}
  0x19   :  { %s351_s6 = scalar_lea.vmem %s416_s15, 2048  ;;  %p356_p12 = scmp.lt.s32.totalorder %s416_s15, %s416_s15 }
  0x1a   :  { %p352_p11 = scmp.ne.s32.totalorder %s416_s15, %s351_s6  ;;  %p357_p13 = scmp.lt.s32.totalorder %s351_s6, %s351_s6 }
  0x1c   :  { %p358_p0 = por %p357_p13, %p356_p12 }
  0x1e   :  { %p359_p1 = pnand %p358_p0, %p352_p11 }
  0x20   :  { %362 = shalt.err (!%p359_p1)
}
  0x21   :  { %s393_s0 = smov 64   ;;  %s394_s7 = smov 4  }
  0x22   :  { %32 = dma.hbm_to_vmem [thread:$0]  %s463_s1, 2048, %s416_s15, [#allocation7], %s393_s0, %s393_s0, %s394_s7  }
  0x23   :  { %385 = dma.done.wait [#allocation4], 128  }
  0x24   :  { %386 = vsyncadd [#allocation4], 4294967168 }
  0x25   :  { %387 = dma.done.wait [#allocation7], 2048  }
  0x26   :  { %388 = vsyncadd [#allocation7], 4294965248  ;;  %v301_v0 = vld [vmem:[#allocation6 + $0x40] sm:$0xff]   ;;  %v303_v2 = vld [vmem:[#allocation6 + $0x48] sm:$0xff]   ;;  %s395_s11 = smov [#allocation8]  }
  0x27   :  { %v302_v1 = vld [vmem:[#allocation6] sm:$0xff]   ;;  %274 = vmatprep.subr.bf16.mxu0 %v301_v0  ;;  %v304_v3 = vld [vmem:[#allocation6 + $0x8] sm:$0xff]   ;;  %v305_v4 = vld [vmem:[#allocation6 + $0x50] sm:$0xff]   ;;  %s245_s12 = sshll.u32 %s395_s11, 4  ;;  %s246_s12 = int_to_ptr.vmem [resolvable:$true] %s245_s12 }
  0x28   :  { %275 = vmatpush3.bf16.msra.mxu0 %v302_v1  ;;  %v306_v5 = vld [vmem:[#allocation6 + $0x10] sm:$0xff]   ;;  %v307_v6 = vld [vmem:[#allocation6 + $0x58] sm:$0xff]   ;;  %v309_v8 = vld [vmem:[#allocation6 + $0x60] sm:$0xff]   ;;  %s363_s13 = scalar_lea.vmem %s246_s12, 128  ;;  %p368_p3 = scmp.lt.s32.totalorder %s246_s12, %s246_s12 }
  0x29   :  { %276 = vmatprep.subr.bf16.mxu0 %v303_v2  ;;  %v308_v7 = vld [vmem:[#allocation6 + $0x18] sm:$0xff]   ;;  %v310_v9 = vld [vmem:[#allocation6 + $0x20] sm:$0xff]   ;;  %v311_v10 = vld [vmem:[#allocation6 + $0x68] sm:$0xff]   ;;  %p364_p2 = scmp.ne.s32.totalorder %s246_s12, %s363_s13  ;;  %p369_p4 = scmp.lt.s32.totalorder %s363_s13, %s363_s13 }
  0x2a   :  { %v48_v11 = vld [vmem:[#allocation3] sm:$0xff]  ;;  %v312_v13 = vld [vmem:[#allocation6 + $0x28] sm:$0xff]   ;;  %v313_v14 = vld [vmem:[#allocation6 + $0x70] sm:$0xff]  }
  0x2b   :  { %v256_v12 = vcombine.high %v48_v11, %v48_v11  ;;  %v314_v15 = vld [vmem:[#allocation6 + $0x30] sm:$0xff]   ;;  %v315_v16 = vld [vmem:[#allocation6 + $0x78] sm:$0xff]   ;;  %v255_v18 = vcombine.low %v48_v11, %v48_v11  ;;  %p370_p5 = por %p369_p4, %p368_p3 }
  0x2c   :  { %277 = vmatpush3.bf16.msra.mxu0 %v304_v3  ;;  %v316_v17 = vld [vmem:[#allocation6 + $0x38] sm:$0xff]  }
  0x2d   :  { %278 = vmatprep.subr.bf16.mxu0 %v305_v4  ;;  %216 = vmatprep.mubr.bf16.mxu0 %v256_v12  ;;  %v273_v21 = vld [vmem:[%s464_s2] ss:$0 sm:$0xff]  ;;  %p371_p6 = pnand %p370_p5, %p364_p2 }
  0x30   :  { %279 = vmatpush3.bf16.msra.mxu0 %v306_v5 }
  0x31   :  { %280 = vmatprep.subr.bf16.mxu0 %v307_v6 }
  0x34   :  { %281 = vmatpush3.bf16.msra.mxu0 %v308_v7 }
  0x35   :  { %282 = vmatprep.subr.bf16.mxu0 %v309_v8 }
  0x38   :  { %283 = vmatpush3.bf16.msra.mxu0 %v310_v9 }
  0x39   :  { %284 = vmatprep.subr.bf16.mxu0 %v311_v10 }
  0x3c   :  { %285 = vmatpush3.bf16.msra.mxu0 %v312_v13 }
  0x3d   :  { %286 = vmatprep.subr.bf16.mxu0 %v313_v14 }
  0x40   :  { %287 = vmatpush3.bf16.msra.mxu0 %v314_v15 }
  0x41   :  { %288 = vmatprep.subr.bf16.mxu0 %v315_v16 }
  0x44   :  { %289 = vmatpush3.bf16.msra.mxu0 %v316_v17 }
  0x47   :  { %217 = vmatmul.mubr.bf16.vlgmr.msra.gmra.mrb[0].mxu0 %v255_v18 }
 0x11a   :  { %v290_v19 = vpop.f32.mrb[0].mxu0 }
 0x11b   :  { %v291_v20 = vpop.f32.mrb[1].mxu0 }
 0x11c   :  { %v292_v22 = vadd.f32 %v291_v20, %v290_v19  ;;  %v293_v23 = vpop.f32.mrb[2].mxu0 }
 0x11d   :  { %v294_v24 = vpop.f32.mrb[3].mxu0 }
 0x11e   :  { %v237_v25 = vadd.f32 %v292_v22, %v273_v21 }
 0x120   :  { %238 = vst [vmem:[#allocation8] sm:$0xff] %v237_v25 }
 0x121   :  { %374 = shalt.err (!%p371_p6)
}
 0x122   :  { %s375_s16 = scalar_lea.hbm %s465_s3, 128 }
 0x123   :  { %p376_p7 = scmp.ne.s32.totalorder %s465_s3, %s375_s16  ;;  %p379_p8 = scmp.lt.u32.totalorder %s375_s16, %s465_s3 }
 0x125   :  { %p381_p9 = pnand %p379_p8, %p376_p7 }
 0x127   :  { %384 = shalt.err (!%p381_p9)
}
 0x128   :  { %248 = dma.vmem_to_hbm [thread:$0]  %s246_s12, 128, %s465_s3, [#allocation5]  }
 0x129   :  { %389 = dma.done.wait [#allocation5], 128  }
 0x12a   :  { %390 = vsyncadd [#allocation5], 4294967168 }
 0x12b   :  { %252 = vsyncpa [#allocation4], 1 }
 0x12c   :  { %253 = vsyncpa [#allocation7], 1 }
 0x12d   :  { %254 = vsyncpa [#allocation5], 1 }

</bundles_post_ra>
